<compile_context>
chip_gen: v5e
topology: v5e:2x2
jax: 0.10.0
libtpu: 0.0.40
codegen_flags: <defaults>
</compile_context>

<pallas_src>
import jax
import jax.numpy as jnp
import numpy as np
from jax.experimental import pallas as pl
from jax.experimental.pallas import tpu as pltpu

_CHUNK = 128  # points per in-kernel chunk (one vreg lane width)


def _round_up(x, m):
    return ((x + m - 1) // m) * m


# ----------------------------------------------------------------------------
# Kernel bodies
# ----------------------------------------------------------------------------
def _load_gt_params(gt_ref):
    """Per-gt columns: cx, cy, mean_x, mean_y, -1/(2 sx^2), -1/(2 sy^2)."""
    return (gt_ref[:, 0:1], gt_ref[:, 1:2], gt_ref[:, 2:3],
            gt_ref[:, 3:4], gt_ref[:, 4:5], gt_ref[:, 5:6])


def _prior_chunk(pt_ref, sl, params):
    """Lane-dense (G_pad, CHUNK) center prior for one 128-point chunk."""
    cx, cy, mx, my, nkx, nky = params
    px = pt_ref[0:1, sl]            # (1, C)
    py = pt_ref[1:2, sl]
    inv_s = pt_ref[2:3, sl]
    dx = (px - cx) * inv_s - mx     # (G_pad, C)
    dy = (py - cy) * inv_s - my
    # single fused exp; nkx/nky are pre-negated -> no unary minus
    return jnp.exp(dx * dx * nkx + dy * dy * nky)


def _center_prior_fused_kernel(pt_ref, gt_ref, mask_ref, out_ref):
    """Masked prior stored directly in (num_points, num_gt) layout.

    Compute stays lane-dense over points; each 128-point chunk is transposed
    on the XLU and the provided inside-gt mask (native (P, G) layout, int8)
    is applied in the same pass as the store.
    """
    params = _load_gt_params(gt_ref)
    tile, n_gt = out_ref.shape
    for c in range(tile // _CHUNK):
        sl = slice(c * _CHUNK, (c + 1) * _CHUNK)
        w = _prior_chunk(pt_ref, sl, params)          # (G_pad, C) lane-dense
        wt = w.T[:, :n_gt]                            # (C, n_gt) via XLU
        out_ref[sl, :] = jnp.where(mask_ref[sl, :] != 0, wt, 0.0)


def _center_prior_raw_kernel(pt_ref, gt_ref, out_ref):
    """Unmasked prior, lane-dense (G_pad, num_points) layout (force_topk)."""
    params = _load_gt_params(gt_ref)
    tile = out_ref.shape[1]
    for c in range(tile // _CHUNK):
        sl = slice(c * _CHUNK, (c + 1) * _CHUNK)
        out_ref[:, sl] = _prior_chunk(pt_ref, sl, params)


# ----------------------------------------------------------------------------
# Tile selection: VMEM-budget driven, multiple of 128, >= 2 grid steps (v7x)
# ----------------------------------------------------------------------------
def _pick_tile(num_points, num_gt, max_tile_points):
    max_tile_points = max(128, (max_tile_points // 128) * 128)
    p_lanes = _round_up(max(num_points, 1), 128)
    g_lanes = _round_up(max(num_gt, 1), 128)
    # Per point-column VMEM (double buffered): pt slab (8 sublanes f32) +
    # lane-padded f32 output block + lane-padded int8 mask block.
    per_col = 2 * (8 * 4 + g_lanes * 4 + g_lanes)
    budget = 12 << 20                     # safe on v5e/v6e/v7x scoped defaults
    vmem_tile = max(128, (budget // per_col) // 128 * 128)
    tile = min(p_lanes, vmem_tile, max_tile_points)
    # keep at least 2 grid steps so the "parallel" axis can shard across both
    # TensorCores on v7x (harmless on single-TC v5e/v6e)
    if p_lanes >= 256:
        tile = min(tile, max(128, _round_up(p_lanes // 2, 128)))
    return tile


# ----------------------------------------------------------------------------
# Wrapper: mirrors CenterPrior.forward
# ----------------------------------------------------------------------------
def center_prior_forward(anchor_points_list, gt_bboxes, labels,
                         inside_gt_bbox_mask, mean, sigma,
                         strides=(8, 16, 32, 64, 128),
                         force_topk=False, topk=9, max_tile_points=4096):
    num_gt = int(labels.shape[0])
    points = jnp.concatenate(anchor_points_list, axis=0).astype(jnp.float32)
    num_points = int(points.shape[0])
    inside_gt_bbox_mask = inside_gt_bbox_mask.astype(jnp.bool_)

    if num_gt == 0:
        return jnp.zeros((num_points, 0), jnp.float32), inside_gt_bbox_mask

    # per-point stride (constant within each pyramid level)
    stride_per_point = jnp.concatenate([
        jnp.full((int(pts.shape[0]),), float(s), dtype=jnp.float32)
        for pts, s in zip(anchor_points_list, strides)
    ], axis=0)

    # (3, P) per-point slab: x, y, 1/stride  -> one small input DMA stream
    pt_slab = jnp.stack(
        [points[:, 0], points[:, 1], 1.0 / stride_per_point], axis=0)

    # (G_pad, 6) per-gt slab: cx, cy, mean_x, mean_y, -1/(2 sx^2), -1/(2 sy^2)
    gt_bboxes = gt_bboxes.astype(jnp.float32)
    cx = (gt_bboxes[:, 0] + gt_bboxes[:, 2]) * 0.5
    cy = (gt_bboxes[:, 1] + gt_bboxes[:, 3]) * 0.5
    mx = mean[labels, 0].astype(jnp.float32)
    my = mean[labels, 1].astype(jnp.float32)
    sx = sigma[labels, 0].astype(jnp.float32)
    sy = sigma[labels, 1].astype(jnp.float32)
    gt_slab = jnp.stack(
        [cx, cy, mx, my, -1.0 / (2.0 * sx * sx), -1.0 / (2.0 * sy * sy)],
        axis=1)
    g_pad = _round_up(num_gt, 8)
    if g_pad != num_gt:
        gt_slab = jnp.pad(gt_slab, ((0, g_pad - num_gt), (0, 0)))

    tile = _pick_tile(num_points, num_gt, max_tile_points)
    grid = (pl.cdiv(num_points, tile),)
    cparams = pltpu.CompilerParams(dimension_semantics=("parallel",))

    pt_spec = pl.BlockSpec((3, tile), lambda i: (0, i))
    gt_spec = pl.BlockSpec((g_pad, 6), lambda i: (0, 0))      # resident slab

    if not force_topk:
        # mask consumed in its native (P, G) layout; only a bool->int8 cast.
        mask_i8 = inside_gt_bbox_mask.astype(jnp.int8)
        pg_spec = pl.BlockSpec((tile, num_gt), lambda i: (i, 0))
        weights = pl.pallas_call(
            _center_prior_fused_kernel,
            out_shape=jax.ShapeDtypeStruct((num_points, num_gt), jnp.float32),
            grid_spec=pltpu.PrefetchScalarGridSpec(
                num_scalar_prefetch=0, grid=grid,
                in_specs=[pt_spec, gt_spec, pg_spec],
                out_specs=pg_spec),
            compiler_params=cparams,
        )(pt_slab, gt_slab, mask_i8)
        return weights, inside_gt_bbox_mask

    # force_topk: per the spec, top-k is taken over the UNMASKED prior for
    # gts with no inside point; those points are added to the mask, then the
    # weights are zeroed by the updated mask (forced points keep raw weight).
    gp_spec = pl.BlockSpec((g_pad, tile), lambda i: (0, i))
    raw_gp = pl.pallas_call(
        _center_prior_raw_kernel,
        out_shape=jax.ShapeDtypeStruct((g_pad, num_points), jnp.float32),
        grid_spec=pltpu.PrefetchScalarGridSpec(
            num_scalar_prefetch=0, grid=grid,
            in_specs=[pt_spec, gt_spec],
            out_specs=gp_spec),
        compiler_params=cparams,
    )(pt_slab, gt_slab)
    raw_gp = raw_gp[:num_gt]                                   # (G, P)

    no_inside = jnp.sum(inside_gt_bbox_mask, axis=0) == 0      # (G,)
    topk_idx = jax.lax.top_k(raw_gp, topk)[1]                  # (G, topk)
    forced = jnp.zeros((num_gt, num_points), jnp.bool_)
    forced = forced.at[jnp.arange(num_gt)[:, None], topk_idx].set(True)
    mask_out = jnp.where(no_inside[None, :],
                         inside_gt_bbox_mask | forced.T,
                         inside_gt_bbox_mask)
    # transpose + mask + write fuse into one XLA pass on this rare path
    weights = jnp.where(mask_out, raw_gp.T, 0.0)
    return weights, mask_out


# ----------------------------------------------------------------------------
# Pure-JAX references (for validation)
# ----------------------------------------------------------------------------
def center_prior_raw_reference(anchor_points_list, gt_bboxes, labels,
                               mean, sigma, strides):
    cx = (gt_bboxes[:, 0] + gt_bboxes[:, 2]) * 0.5
    cy = (gt_bboxes[:, 1] + gt_bboxes[:, 3]) * 0.5
    gt_center = jnp.stack([cx, cy], axis=1)[None]             # (1, G, 2)
    inst_mean = mean[labels][None]                            # (1, G, 2)
    inst_sigma = sigma[labels][None]                          # (1, G, 2)
    pieces = []
    for pts, s in zip(anchor_points_list, strides):
        p = pts[:, None, :]                                   # (P_l, 1, 2)
        dist = ((p - gt_center) / float(s) - inst_mean) ** 2
        prior = jnp.prod(jnp.exp(-dist / (2.0 * inst_sigma ** 2)), axis=-1)
        pieces.append(prior)
    return jnp.concatenate(pieces, axis=0)                    # (P, G) unmasked


def _inside_mask(points, boxes):
    return ((points[:, None, 0] >= boxes[None, :, 0])
            & (points[:, None, 0] <= boxes[None, :, 2])
            & (points[:, None, 1] >= boxes[None, :, 1])
            & (points[:, None, 1] <= boxes[None, :, 3]))


# ----------------------------------------------------------------------------
# Demo
# ----------------------------------------------------------------------------
if __name__ == "__main__":
    key = jax.random.PRNGKey(0)

    num_classes = 80
    strides = (8, 16)                 # two pyramid levels for the small demo
    feat_sizes = ((16, 16), (8, 8))   # -> 256 + 64 = 320 anchor points
    num_gt = 9                        # not a multiple of 8: exercises padding

    k1, k2, k3, k4, k5 = jax.random.split(key, 5)
    mean = jax.random.uniform(k4, (num_classes, 2), minval=-0.3, maxval=0.3)
    sigma = jax.random.uniform(k5, (num_classes, 2), minval=0.5, maxval=1.5)

    # Anchor points: standard (x + 0.5) * stride grid per level, (P_l, 2)
    anchor_points_list = []
    for (h, w), s in zip(feat_sizes, strides):
        ys, xs = jnp.meshgrid(jnp.arange(h, dtype=jnp.float32),
                              jnp.arange(w, dtype=jnp.float32),
                              indexing="ij")
        pts = jnp.stack([(xs.reshape(-1) + 0.5) * s,
                         (ys.reshape(-1) + 0.5) * s], axis=1)
        anchor_points_list.append(pts)
    all_points = jnp.concatenate(anchor_points_list, axis=0)   # (P, 2)
    num_points = int(all_points.shape[0])

    # Deterministic gt boxes / labels / inside mask
    xy0 = jax.random.uniform(k1, (num_gt, 2), minval=0.0, maxval=64.0)
    wh = jax.random.uniform(k2, (num_gt, 2), minval=16.0, maxval=64.0)
    gt_bboxes = jnp.concatenate([xy0, xy0 + wh], axis=1).astype(jnp.float32)
    labels = jax.random.randint(k3, (num_gt,), 0, num_classes)
    inside_gt_bbox_mask = _inside_mask(all_points, gt_bboxes)   # (P, G) bool

    # ---------------- default path (force_topk=False) ----------------
    weights, mask_out = center_prior_forward(
        anchor_points_list, gt_bboxes, labels, inside_gt_bbox_mask,
        mean, sigma, strides=strides)
    weights = jax.block_until_ready(weights)
    mask_out = jax.block_until_ready(mask_out)

    raw_ref = center_prior_raw_reference(
        anchor_points_list, gt_bboxes, labels, mean, sigma, strides)
    ref = jnp.where(inside_gt_bbox_mask, raw_ref, 0.0)

    assert weights.shape == (num_points, num_gt)
    assert weights.dtype == jnp.float32
    assert mask_out.shape == (num_points, num_gt)
    assert mask_out.dtype == jnp.bool_
    np.testing.assert_allclose(np.asarray(weights), np.asarray(ref),
                               rtol=2e-5, atol=1e-6)
    np.testing.assert_array_equal(np.asarray(mask_out),
                                  np.asarray(inside_gt_bbox_mask))

    # ---------------- force_topk path ----------------
    far_box = jnp.array([[1000.0, 1000.0, 1016.0, 1016.0]], jnp.float32)
    gt_bboxes_ft = jnp.concatenate([gt_bboxes, far_box], axis=0)
    labels_ft = jnp.concatenate(
        [labels, jnp.array([3], dtype=labels.dtype)], axis=0)
    inside_ft = _inside_mask(all_points, gt_bboxes_ft)          # (P, G+1)

    w_ft, m_ft = center_prior_forward(
        anchor_points_list, gt_bboxes_ft, labels_ft, inside_ft,
        mean, sigma, strides=strides, force_topk=True, topk=9)
    w_ft = jax.block_until_ready(w_ft)
    m_ft = jax.block_until_ready(m_ft)

    m_ft_np = np.asarray(m_ft)
    inside_ft_np = np.asarray(inside_ft)
    no_inside = ~inside_ft_np.any(axis=0)
    assert no_inside.any()
    # gts with no inside point get exactly `topk` forced points
    assert (m_ft_np[:, no_inside].sum(axis=0) == 9).all()
    # other gts keep their original mask
    np.testing.assert_array_equal(m_ft_np[:, ~no_inside],
                                  inside_ft_np[:, ~no_inside])
    raw_ref_ft = center_prior_raw_reference(
        anchor_points_list, gt_bboxes_ft, labels_ft, mean, sigma, strides)
    ref_ft = np.where(m_ft_np, np.asarray(raw_ref_ft), 0.0)
    np.testing.assert_allclose(np.asarray(w_ft), ref_ft, rtol=2e-5, atol=1e-6)

    print("KERNEL_OK")
</pallas_src>

<mosaic_0001>
module attributes {stable_mosaic.version = 11 : i64} {
  func.func @_center_prior_fused_kernel(%arg0: i32, %arg1: memref<3x256xf32, #tpu.memory_space<vmem>>, %arg2: memref<16x6xf32, #tpu.memory_space<vmem>>, %arg3: memref<256x9xi8, #tpu.memory_space<vmem>>, %arg4: memref<256x9xf32, #tpu.memory_space<vmem>>) attributes {dimension_semantics = [#tpu.dimension_semantics<parallel>], iteration_bounds = array<i64: 2>, scalar_prefetch = 0 : i64, scratch_operands = 0 : i64, tpu.core_type = #tpu.core_type<tc>, window_params = [{transform_indices = @transform_0, window_bounds = array<i64: 3, 256>}, {pipeline_mode = #tpu.pipeline_mode<synchronous>, transform_indices = @transform_1, window_bounds = array<i64: 16, 6>}, {transform_indices = @transform_2, window_bounds = array<i64: 256, 9>}, {transform_indices = @transform_3, window_bounds = array<i64: 256, 9>}]} {
    %c0 = arith.constant 0 : index
    %c0_0 = arith.constant 0 : index
    %0 = vector.load %arg2[%c0, %c0_0] : memref<16x6xf32, #tpu.memory_space<vmem>>, vector<16x1xf32>
    %c0_1 = arith.constant 0 : index
    %c1 = arith.constant 1 : index
    %1 = vector.load %arg2[%c0_1, %c1] : memref<16x6xf32, #tpu.memory_space<vmem>>, vector<16x1xf32>
    %c0_2 = arith.constant 0 : index
    %c2 = arith.constant 2 : index
    %2 = vector.load %arg2[%c0_2, %c2] : memref<16x6xf32, #tpu.memory_space<vmem>>, vector<16x1xf32>
    %c0_3 = arith.constant 0 : index
    %c3 = arith.constant 3 : index
    %3 = vector.load %arg2[%c0_3, %c3] : memref<16x6xf32, #tpu.memory_space<vmem>>, vector<16x1xf32>
    %c0_4 = arith.constant 0 : index
    %c4 = arith.constant 4 : index
    %4 = vector.load %arg2[%c0_4, %c4] : memref<16x6xf32, #tpu.memory_space<vmem>>, vector<16x1xf32>
    %c0_5 = arith.constant 0 : index
    %c5 = arith.constant 5 : index
    %5 = vector.load %arg2[%c0_5, %c5] : memref<16x6xf32, #tpu.memory_space<vmem>>, vector<16x1xf32>
    %c0_6 = arith.constant 0 : index
    %c0_7 = arith.constant 0 : index
    %6 = vector.load %arg1[%c0_6, %c0_7] : memref<3x256xf32, #tpu.memory_space<vmem>>, vector<1x128xf32>
    %c1_8 = arith.constant 1 : index
    %c0_9 = arith.constant 0 : index
    %7 = vector.load %arg1[%c1_8, %c0_9] : memref<3x256xf32, #tpu.memory_space<vmem>>, vector<1x128xf32>
    %c2_10 = arith.constant 2 : index
    %c0_11 = arith.constant 0 : index
    %8 = vector.load %arg1[%c2_10, %c0_11] : memref<3x256xf32, #tpu.memory_space<vmem>>, vector<1x128xf32>
    %9 = vector.broadcast %6 : vector<1x128xf32> to vector<16x128xf32>
    %10 = vector.broadcast %0 : vector<16x1xf32> to vector<16x128xf32>
    %11 = arith.subf %9, %10 : vector<16x128xf32>
    %12 = vector.broadcast %8 : vector<1x128xf32> to vector<16x128xf32>
    %13 = arith.mulf %11, %12 : vector<16x128xf32>
    %14 = vector.broadcast %2 : vector<16x1xf32> to vector<16x128xf32>
    %15 = arith.subf %13, %14 : vector<16x128xf32>
    %16 = vector.broadcast %7 : vector<1x128xf32> to vector<16x128xf32>
    %17 = vector.broadcast %1 : vector<16x1xf32> to vector<16x128xf32>
    %18 = arith.subf %16, %17 : vector<16x128xf32>
    %19 = vector.broadcast %8 : vector<1x128xf32> to vector<16x128xf32>
    %20 = arith.mulf %18, %19 : vector<16x128xf32>
    %21 = vector.broadcast %3 : vector<16x1xf32> to vector<16x128xf32>
    %22 = arith.subf %20, %21 : vector<16x128xf32>
    %23 = arith.mulf %15, %15 : vector<16x128xf32>
    %24 = vector.broadcast %4 : vector<16x1xf32> to vector<16x128xf32>
    %25 = arith.mulf %23, %24 : vector<16x128xf32>
    %26 = arith.mulf %22, %22 : vector<16x128xf32>
    %27 = vector.broadcast %5 : vector<16x1xf32> to vector<16x128xf32>
    %28 = arith.mulf %26, %27 : vector<16x128xf32>
    %29 = arith.addf %25, %28 : vector<16x128xf32>
    %30 = math.exp %29 : vector<16x128xf32>
    %31 = tpu.transpose %30, [1, 0] : vector<16x128xf32> -> vector<128x16xf32>
    %32 = vector.extract_strided_slice %31 {offsets = [0, 0], sizes = [128, 9], strides = [1, 1]} : vector<128x16xf32> to vector<128x9xf32>
    %c0_12 = arith.constant 0 : index
    %c0_13 = arith.constant 0 : index
    %33 = vector.load %arg3[%c0_12, %c0_13] : memref<256x9xi8, #tpu.memory_space<vmem>>, vector<128x9xi8>
    %c0_i8 = arith.constant 0 : i8
    %34 = vector.broadcast %c0_i8 : i8 to vector<128x9xi8>
    %35 = arith.cmpi ne, %33, %34 : vector<128x9xi8>
    %cst = arith.constant 0.000000e+00 : f32
    %36 = vector.broadcast %cst : f32 to vector<128x9xf32>
    %37 = arith.select %35, %32, %36 : vector<128x9xi1>, vector<128x9xf32>
    %c0_14 = arith.constant 0 : index
    %c0_15 = arith.constant 0 : index
    %38 = vector.load %arg4[%c0_14, %c0_15] : memref<256x9xf32, #tpu.memory_space<vmem>>, vector<128x9xf32>
    tpu.vector_store %arg4[%c0_14, %c0_15], %37 {strides = array<i32>} : memref<256x9xf32, #tpu.memory_space<vmem>>, vector<128x9xf32>,
    %c0_16 = arith.constant 0 : index
    %c128 = arith.constant 128 : index
    %39 = vector.load %arg1[%c0_16, %c128] : memref<3x256xf32, #tpu.memory_space<vmem>>, vector<1x128xf32>
    %c1_17 = arith.constant 1 : index
    %c128_18 = arith.constant 128 : index
    %40 = vector.load %arg1[%c1_17, %c128_18] : memref<3x256xf32, #tpu.memory_space<vmem>>, vector<1x128xf32>
    %c2_19 = arith.constant 2 : index
    %c128_20 = arith.constant 128 : index
    %41 = vector.load %arg1[%c2_19, %c128_20] : memref<3x256xf32, #tpu.memory_space<vmem>>, vector<1x128xf32>
    %42 = vector.broadcast %39 : vector<1x128xf32> to vector<16x128xf32>
    %43 = vector.broadcast %0 : vector<16x1xf32> to vector<16x128xf32>
    %44 = arith.subf %42, %43 : vector<16x128xf32>
    %45 = vector.broadcast %41 : vector<1x128xf32> to vector<16x128xf32>
    %46 = arith.mulf %44, %45 : vector<16x128xf32>
    %47 = vector.broadcast %2 : vector<16x1xf32> to vector<16x128xf32>
    %48 = arith.subf %46, %47 : vector<16x128xf32>
    %49 = vector.broadcast %40 : vector<1x128xf32> to vector<16x128xf32>
    %50 = vector.broadcast %1 : vector<16x1xf32> to vector<16x128xf32>
    %51 = arith.subf %49, %50 : vector<16x128xf32>
    %52 = vector.broadcast %41 : vector<1x128xf32> to vector<16x128xf32>
    %53 = arith.mulf %51, %52 : vector<16x128xf32>
    %54 = vector.broadcast %3 : vector<16x1xf32> to vector<16x128xf32>
    %55 = arith.subf %53, %54 : vector<16x128xf32>
    %56 = arith.mulf %48, %48 : vector<16x128xf32>
    %57 = vector.broadcast %4 : vector<16x1xf32> to vector<16x128xf32>
    %58 = arith.mulf %56, %57 : vector<16x128xf32>
    %59 = arith.mulf %55, %55 : vector<16x128xf32>
    %60 = vector.broadcast %5 : vector<16x1xf32> to vector<16x128xf32>
    %61 = arith.mulf %59, %60 : vector<16x128xf32>
    %62 = arith.addf %58, %61 : vector<16x128xf32>
    %63 = math.exp %62 : vector<16x128xf32>
    %64 = tpu.transpose %63, [1, 0] : vector<16x128xf32> -> vector<128x16xf32>
    %65 = vector.extract_strided_slice %64 {offsets = [0, 0], sizes = [128, 9], strides = [1, 1]} : vector<128x16xf32> to vector<128x9xf32>
    %c128_21 = arith.constant 128 : index
    %c0_22 = arith.constant 0 : index
    %66 = vector.load %arg3[%c128_21, %c0_22] : memref<256x9xi8, #tpu.memory_space<vmem>>, vector<128x9xi8>
    %c0_i8_23 = arith.constant 0 : i8
    %67 = vector.broadcast %c0_i8_23 : i8 to vector<128x9xi8>
    %68 = arith.cmpi ne, %66, %67 : vector<128x9xi8>
    %cst_24 = arith.constant 0.000000e+00 : f32
    %69 = vector.broadcast %cst_24 : f32 to vector<128x9xf32>
    %70 = arith.select %68, %65, %69 : vector<128x9xi1>, vector<128x9xf32>
    %c128_25 = arith.constant 128 : index
    %c0_26 = arith.constant 0 : index
    %71 = vector.load %arg4[%c128_25, %c0_26] : memref<256x9xf32, #tpu.memory_space<vmem>>, vector<128x9xf32>
    tpu.vector_store %arg4[%c128_25, %c0_26], %70 {strides = array<i32>} : memref<256x9xf32, #tpu.memory_space<vmem>>, vector<128x9xf32>,
    return
  }
  func.func @transform_0(%arg0: i32) -> (i32, i32) {
    %c0_i32 = arith.constant 0 : i32
    %c0_i32_0 = arith.constant 0 : i32
    return %c0_i32, %arg0 : i32, i32
  }
  func.func @transform_1(%arg0: i32) -> (i32, i32) {
    %c0_i32 = arith.constant 0 : i32
    %c0_i32_0 = arith.constant 0 : i32
    %c0_i32_1 = arith.constant 0 : i32
    return %c0_i32, %c0_i32_0 : i32, i32
  }
  func.func @transform_2(%arg0: i32) -> (i32, i32) {
    %c0_i32 = arith.constant 0 : i32
    %c0_i32_0 = arith.constant 0 : i32
    return %arg0, %c0_i32 : i32, i32
  }
  func.func @transform_3(%arg0: i32) -> (i32, i32) {
    %c0_i32 = arith.constant 0 : i32
    %c0_i32_0 = arith.constant 0 : i32
    return %arg0, %c0_i32 : i32, i32
  }
}

</mosaic_0001>

<bundles_post_ra>
// kernel: tpu_custom_call.1
= control target key start
LH: loop header
LB: loop body
LE: loop exit
PB: predicated region body
PF: predicated region fallthrough
CT: control target
= control target key end

     0   :  { %s1256_s12 = smov 0   ;;  %s1258_s13 = smov 0   ;;  %s1590_s0 = inlined_call_operand.vmem [shape: f32[3,320], index: 0, kind: input, shape index: {}]   ;;  %s1591_s1 = inlined_call_operand.vmem [shape: f32[16,6], index: 1, kind: input, shape index: {}]   ;;  %s1592_s2 = inlined_call_operand.vmem [shape: s8[320,9], index: 2, kind: input, shape index: {}]   ;;  %s1593_s3 = inlined_call_operand.vmem [shape: f32[320,9], index: 3, kind: output, shape index: {}]  }
   0x1   :  { %s1260_s14 = smov 0  }
   0x2 LB: > { %s1269_s15 = sadd.s32 4294967295, %s1196_s14   ;;  %s1271_s16 = sadd.s32 1, %s1196_s14   ;;  %s1196_s14 = sphi %s1260_s14, %s1602_s14   ;;  %s1192_s13 = sphi %s1258_s13, %s1601_s13   ;;  %s1188_s12 = sphi %s1256_s12, %s1600_s12  }
   0x3   : > { %s90_s17 = ssub.s32 %s1196_s14, %s1271_s16  ;;  %s93_s18 = sadd.s32 1, %s1192_s13 }
   0x4   : > { %p91_p0 = scmp.eq.s32.totalorder %s90_s17, 0  ;;  %p103_p1 = scmp.ne.s32.totalorder %s1192_s13, %s1188_s12 }
   0x5   : > { %p104_p2 = scmp.eq.s32.totalorder %s1269_s15, 1  ;;  %p996_p3 = scmp.ge.s32.totalorder %s1196_s14, 1 }
   0x6   : > { %s1279_s19 = scalar_select %p91_p0, %s1192_s13, %s93_s18  }
   0x7   : > { %p1281_p4 = por %p104_p2, %p103_p1  ;;  %p165_p5 = scmp.lt.s32.totalorder %s1196_s14, 3 }
   0x9   : > { %p166_p6 = pnand %p996_p3, %p165_p5 }
   0xa   : > { %s998_s25 = sshll.u32 (!%p166_p6), %s1269_s15, 1  ;;  %s1308_s30 = sshll.u32 (!%p166_p6), %s1269_s15, 5 }
   0xb   : > { %169 = sbr.rel (%p166_p6) target bundleno = 525 (0x20d), region = 32  ;;  %p206_p7 = scmp.lt.s32.totalorder (!%p166_p6), %s998_s25, 2 }
   0xc   : > { %p220_p8 = scmp.lt.s32.totalorder (!%p166_p6), %s1308_s30, 39  ;;  %s198_s9 = sand.u32 (!%p166_p6), 1, %s1188_s12  }
   0xd   : > { %s997_s10 = sshll.u32 (!%p166_p6), %s198_s9, 8 }
   0xe   : > { %s1324_s11 = scalar_lea.vmem (!%p166_p6), [#allocation2], %s997_s10  }
  0x10   : > { %v237_v0 = vld [vmem:[%s1591_s1 + $0x8] sm:$0xff]  ;;  %v236_v1 = vld [vmem:[%s1591_s1] sm:$0xff]  ;;  %v1230_v2 = vmov 0   ;;  %v1231_v3 = vmov 2   ;;  %s1604_s25 = smov (!%p206_p7, %s998_s25), 2  ;;  %v1232_v4 = vmov 1  }
  0x11   : > { %1119 = vset.pattern.permute.xlu1 %v1230_v2  ;;  %1117 = vset.pattern.permute.xlu0 %v1230_v2  ;;  %s999_s26 = sshll.u32 %s1604_s25, 2  ;;  %v1233_v5 = vmov 3   ;;  %v1234_v6 = vmov 4   ;;  %v1235_v7 = vmov 5   ;;  %vm448_vm3 = vcmask 72704   ;;  %s649_s12 = ssub.s32 (%p1281_p4), 40, %s1308_s30 }
  0x12   : > { %249 = vperm.xlu1 %1119, %v237_v0   ;;  %244 = vperm.xlu0 %1117, %v236_v1   ;;  %s1297_s29 = scalar_lea.vmem %s1590_s0, %s999_s26  ;;  %s1019_s14 = sshll.u32 (%p1281_p4), %s1269_s15, 8 }
  0x13   : > { %1121 = vset.pattern.permute.xlu2 %v1231_v3  ;;  %v1128_v12 = vld [vmem:[%s1297_s29] ss:$0 sm:$0xff]  ;;  %v1129_v13 = vld [vmem:[%s1297_s29 + $0x4] ss:$0 sm:$0xff]  ;;  %v1132_v14 = vld [vmem:[%s1297_s29 + $0x1] ss:$0 sm:$0xff]  ;;  %s1455_s21 = scalar_lea.vmem (%p1281_p4), %s1593_s3, %s1019_s14  }
  0x14   : > { %258 = vperm.xlu2 %1121, %v236_v1   ;;  %v1133_v15 = vld [vmem:[%s1297_s29 + $0x5] ss:$0 sm:$0xff]  ;;  %v1130_v22 = vld [vmem:[%s1297_s29 + $0x2] ss:$0 sm:$0xff]  ;;  %v1131_v23 = vld [vmem:[%s1297_s29 + $0x6] ss:$0 sm:$0xff] }
  0x15   : > { %s221_s4 = scalar_select %p220_p8, %s1308_s30, 39 }
  0x16   : > { %p650_p9 = scmp.lt.s32.totalorder (%p1281_p4), %s649_s12, 32 }
  0x17   : > { %s1001_s5 = sshll.u32 %s221_s4, 1 }
  0x18   : > { %s1315_s8 = scalar_lea.vmem %s1592_s2, %s1001_s5 }
  0x1a   : > { %1120 = vset.pattern.permute.xlu1 %v1232_v4  ;;  %1118 = vset.pattern.permute.xlu0 %v1232_v4 }
  0x1b   : > { %273 = vperm.xlu1 %1120, %v237_v0   ;;  %269 = vperm.xlu0 %1118, %v236_v1  }
  0x1c   : > { %1122 = vset.pattern.permute.xlu2 %v1233_v5 }
  0x1d   : > { %281 = vperm.xlu2 %1122, %v236_v1  }
  0x23   : > { %1123 = vset.pattern.permute.xlu1 %v1231_v3  ;;  %1124 = vset.pattern.permute.xlu0 %v1234_v6 }
  0x24   : > { %262 = vperm.xlu1 %1123, %v237_v0   ;;  %293 = vperm.xlu0 %1124, %v236_v1  }
  0x25   : > { %285 = vperm.xlu2 %1122, %v237_v0  }
  0x2c   : > { %1125 = vset.pattern.permute.xlu1 %v1235_v7 }
  0x2d   : > { %305 = vperm.xlu1 %1125, %v236_v1   ;;  %1126 = vset.pattern.permute.xlu2 %v1234_v6 }
  0x2e   : > { %297 = vperm.xlu2 %1126, %v237_v0  }
  0x35   : > { %309 = vperm.xlu1 %1125, %v237_v0  }
  0x6e   : > { %v259_v9 = vpop.permute.xlu2 %258 }
  0x77   : > { %v282_v18 = vpop.permute.xlu2 %281 }
  0x7f   : > { %v286_v37 = vpop.permute.xlu2 %285 }
  0x84   : > { %v250_v8 = vpop.permute.xlu1 %249  ;;  %v245_v10 = vpop.permute.xlu0 %244 }
  0x85   : > { %v252_v16 = vsub.f32 %v1128_v12, %v245_v10  ;;  %v469_v17 = vsub.f32 %v1129_v13, %v245_v10  ;;  %v253_v29 = vsub.f32 %v1128_v12, %v250_v8  ;;  %v470_v30 = vsub.f32 %v1129_v13, %v250_v8 }
  0x87   : > { %v255_v24 = vmul.f32 %v1130_v22, %v252_v16  ;;  %v472_v25 = vmul.f32 %v1131_v23, %v469_v17  ;;  %v256_v38 = vmul.f32 %v1130_v22, %v253_v29  ;;  %v473_v39 = vmul.f32 %v1131_v23, %v470_v30  ;;  %v352_v16 = vld [vmem:[%s1315_s8] sm:$0x3]  ;;  %v353_v17 = vld [vmem:[%s1315_s8 + $0x2] sm:$0x3] }
  0x88   : > { %v298_v62 = vpop.permute.xlu2 %297  ;;  %vm368_vm0 = vnez %v352_v16  ;;  %vm369_vm1 = vnez %v353_v17 }
  0x89   : > { %v265_v31 = vsub.f32 %v255_v24, %v259_v9  ;;  %v474_v32 = vsub.f32 %v472_v25, %v259_v9 }
  0x8b   : > { %v290_v41 = vmul.f32 %v265_v31, %v265_v31  ;;  %v483_v42 = vmul.f32 %v474_v32, %v474_v32  ;;  %v355_v31 = vld [vmem:[%s1315_s8 + $0x6] sm:$0x3] }
  0x8c   : > { %vm371_vm9 = vnez %v355_v31 }
  0x8d   : > { %v274_v11 = vpop.permute.xlu1 %273  ;;  %v270_v19 = vpop.permute.xlu0 %269 }
  0x8e   : > { %v276_v20 = vsub.f32 %v1132_v14, %v270_v19  ;;  %v477_v21 = vsub.f32 %v1133_v15, %v270_v19  ;;  %v277_v33 = vsub.f32 %v1132_v14, %v274_v11  ;;  %v478_v34 = vsub.f32 %v1133_v15, %v274_v11  ;;  %v529_v19 = vld [vmem:[%s1315_s8 + $0x20] sm:$0x3] }
  0x8f   : > { %vm545_vm4 = vnez %v529_v19 }
  0x90   : > { %v278_v26 = vmul.f32 %v1130_v22, %v276_v20  ;;  %v479_v27 = vmul.f32 %v1131_v23, %v477_v21  ;;  %v279_v43 = vmul.f32 %v1130_v22, %v277_v33  ;;  %v480_v44 = vmul.f32 %v1131_v23, %v478_v34  ;;  %v354_v23 = vld [vmem:[%s1315_s8 + $0x4] sm:$0x3] }
  0x91   : > { %v385_v20 = vsel %vm369_vm1, 16843009, %v1230_v2  ;;  %v561_v25 = vsel %vm545_vm4, 16843009, %v1230_v2  ;;  %vm370_vm5 = vnez %v354_v23  ;;  %v536_v23 = vld [vmem:[%s1315_s8 + $0x2e] sm:$0x3] }
  0x92   : > { %v288_v35 = vsub.f32 %v278_v26, %v282_v18  ;;  %v481_v36 = vsub.f32 %v479_v27, %v282_v18  ;;  %v289_v54 = vsub.f32 %v279_v43, %v286_v37  ;;  %v482_v55 = vsub.f32 %v480_v44, %v286_v37  ;;  %v530_v26 = vld [vmem:[%s1315_s8 + $0x22] sm:$0x3] }
  0x93   : > { %v401_v24 = vunpack.c.0.s8 %v385_v20  ;;  %v577_v27 = vunpack.c.0.s8 %v561_v25  ;;  %vm546_vm7 = vnez %v530_v26 }
  0x94   : > { %v302_v45 = vmul.f32 %v288_v35, %v288_v35  ;;  %v487_v46 = vmul.f32 %v481_v36, %v481_v36  ;;  %v303_v63 = vmul.f32 %v289_v54, %v289_v54  ;;  %v488_v0 = vmul.f32 %v482_v55, %v482_v55  ;;  %v531_v36 = vld [vmem:[%s1315_s8 + $0x24] sm:$0x3] }
  0x95   : > { %vm417_vm6 = vcmp.ne.s32.totalorder %v401_v24, 0  ;;  %vm593_vm8 = vcmp.ne.s32.totalorder %v577_v27, 0  ;;  %v562_v33 = vsel %vm546_vm7, 16843009, %v1230_v2  ;;  %vm547_vm11 = vnez %v531_v36 }
  0x96   : > { %v263_v28 = vpop.permute.xlu1 %262  ;;  %v294_v40 = vpop.permute.xlu0 %293  ;;  %v578_v37 = vunpack.c.0.s8 %v562_v33  ;;  %v563_v43 = vsel %vm547_vm11, 16843009, %v1230_v2  ;;  %v537_v33 = vld [vmem:[%s1315_s8 + $0x30] sm:$0x3] }
  0x97   : > { %v266_v47 = vsub.f32 %v256_v38, %v263_v28  ;;  %v475_v48 = vsub.f32 %v473_v39, %v263_v28  ;;  %v300_v50 = vmul.f32 %v294_v40, %v290_v41  ;;  %v485_v51 = vmul.f32 %v483_v42, %v294_v40  ;;  %v356_v41 = vld [vmem:[%s1315_s8 + $0x8] sm:$0x3] }
  0x98   : > { %v386_v28 = vsel %vm370_vm5, 16843009, %v1230_v2  ;;  %v387_v38 = vsel %vm371_vm9, 16843009, %v1230_v2  ;;  %vm594_vm12 = vcmp.ne.s32.totalorder %v578_v37, 0  ;;  %vm372_vm13 = vnez %v356_v41 }
  0x99   : > { %v291_v58 = vmul.f32 %v266_v47, %v266_v47  ;;  %v484_v59 = vmul.f32 %v475_v48, %v475_v48  ;;  %v402_v32 = vunpack.c.0.s8 %v386_v28  ;;  %v403_v42 = vunpack.c.0.s8 %v387_v38  ;;  %v361_v28 = vld [vmem:[%s1315_s8 + $0x12] sm:$0x3]  ;;  %v362_v38 = vld [vmem:[%s1315_s8 + $0x14] sm:$0x3] }
  0x9a   : > { %v579_v47 = vunpack.c.0.s8 %v563_v43  ;;  %v388_v48 = vsel %vm372_vm13, 16843009, %v1230_v2  ;;  %v538_v43 = vld [vmem:[%s1315_s8 + $0x32] sm:$0x3] }
  0x9b   : > { %v301_v3 = vmul.f32 %v298_v62, %v291_v58  ;;  %v486_v4 = vmul.f32 %v484_v59, %v298_v62  ;;  %vm418_vm10 = vcmp.ne.s32.totalorder %v402_v32, 0  ;;  %vm419_vm14 = vcmp.ne.s32.totalorder %v403_v42, 0 }
  0x9f   : > { %v306_v49 = vpop.permute.xlu1 %305 }
  0xa0   : > { %v312_v52 = vmul.f32 %v306_v49, %v302_v45  ;;  %v489_v53 = vmul.f32 %v487_v46, %v306_v49  ;;  %v532_v46 = vld [vmem:[%s1315_s8 + $0x26] sm:$0x3] }
  0xa1   : > { %vm548_vm15 = vnez %v532_v46 }
  0xa2   : > { %v314_v56 = vadd.f32 %v312_v52, %v300_v50  ;;  %v491_v57 = vadd.f32 %v489_v53, %v485_v51  ;;  %v357_v51 = vld [vmem:[%s1315_s8 + $0xa] sm:$0x3]  ;;  %v404_v52 = vunpack.c.0.s8 %v388_v48  ;;  %v564_v53 = vsel %vm548_vm15, 16843009, %v1230_v2  ;;  %v363_v48 = vld [vmem:[%s1315_s8 + $0x16] sm:$0x3] }
  0xa3   : > { %vm373_vm1 = vnez %v357_v51 }
  0xa4   : > { %v316_v60 = vmul.f32 1.442695, %v314_v56  ;;  %v493_v61 = vmul.f32 1.442695, %v491_v57  ;;  %v533_v56 = vld [vmem:[%s1315_s8 + $0x28] sm:$0x3]  ;;  %v580_v57 = vunpack.c.0.s8 %v564_v53 }
  0xa5   : > { %v389_v58 = vsel %vm373_vm1, 16843009, %v1230_v2  ;;  %vm549_vm4 = vnez %v533_v56  ;;  %v539_v53 = vld [vmem:[%s1315_s8 + $0x34] sm:$0x3] }
  0xa6   : > { %1134 = vpow2.f32 %v316_v60  ;;  %vm596_vm5 = vcmp.ne.s32.totalorder %v580_v57, 0  ;;  %v405_v62 = vunpack.c.0.s8 %v389_v58  ;;  %v364_v58 = vld [vmem:[%s1315_s8 + $0x18] sm:$0x3] }
  0xa7   : > { %1136 = vpow2.f32 %v493_v61  ;;  %v310_v1 = vpop.permute.xlu1 %309  ;;  %v358_v61 = vld [vmem:[%s1315_s8 + $0xc] sm:$0x3] }
  0xa8   : > { %v313_v5 = vmul.f32 %v310_v1, %v303_v63  ;;  %v490_v6 = vmul.f32 %v488_v0, %v310_v1  ;;  %v565_v63 = vsel %vm549_vm4, 16843009, %v1230_v2  ;;  %vm421_vm7 = vcmp.ne.s32.totalorder %v405_v62, 0 }
  0xaa   : > { %v315_v8 = vadd.f32 %v313_v5, %v301_v3  ;;  %v492_v9 = vadd.f32 %v490_v6, %v486_v4  ;;  %v534_v3 = vld [vmem:[%s1315_s8 + $0x2a] sm:$0x3]  ;;  %v581_v4 = vunpack.c.0.s8 %v565_v63  ;;  %v540_v63 = vld [vmem:[%s1315_s8 + $0x36] sm:$0x3] }
  0xac   : > { %v1135_v10 = vpop.eup %1134  ;;  %v318_v11 = vmul.f32 1.442695, %v315_v8  ;;  %v495_v12 = vmul.f32 1.442695, %v492_v9  ;;  %v359_v9 = vld [vmem:[%s1315_s8 + $0xe] sm:$0x3] }
  0xad   : > { %v1137_v13 = vpop.eup %1136  ;;  %320 = vxpose.xlu2.b32.start [1/2] (short) %v1135_v10, 128  ;;  %vm597_vm9 = vcmp.ne.s32.totalorder %v581_v4, 0 }
  0xae   : > { %1138 = vpow2.f32 %v318_v11  ;;  %497 = vxpose.xlu0.b32.start [1/2] (short) %v1137_v13, 128 }
  0xaf   : > { %1140 = vpow2.f32 %v495_v12 }
  0xb4   : > { %v1139_v14 = vpop.eup %1138 }
  0xb5   : > { %v1141_v15 = vpop.eup %1140  ;;  %321 = vxpose.xlu2.b32.end [2/2] (short) %v1139_v14, 128  ;;  %v535_v14 = vld [vmem:[%s1315_s8 + $0x2c] sm:$0x3] }
  0xb6   : > { %498 = vxpose.xlu0.b32.end [2/2] (short) %v1141_v15, 128 }
 0x11d   : > { %1127 = vset.pattern.permute.xlu0 %v1235_v7  ;;  %v384_v7 = vsel %vm368_vm0, 16843009, %v1230_v2  ;;  %vm595_vm0 = vcmp.ne.s32.totalorder %v579_v47, 0 }
 0x11e   : > { %v400_v18 = vunpack.c.0.s8 %v384_v7 }
 0x120   : > { %vm416_vm2 = vcmp.ne.s32.totalorder %v400_v18, 0  ;;  %v360_v18 = vld [vmem:[%s1315_s8 + $0x10] sm:$0x3] }
 0x146   : > { %v336_v21 = vpop.trf.xlu2 }
 0x147   : > { %v432_v22 = vsel %vm416_vm2, %v336_v21, 0.0  ;;  %vm420_vm2 = vcmp.ne.s32.totalorder %v404_v52, 0 }
 0x148   : > { %449 = vst.msk [vmem:[%s1324_s11] sm:$0xff] %vm448_vm3, %v432_v22 }
 0x14e   : > { %v337_v29 = vpop.trf.xlu2 }
 0x14f   : > { %v433_v30 = vsel %vm417_vm6, %v337_v29, 0.0  ;;  %vm374_vm6 = vnez %v358_v61 }
 0x150   : > { %450 = vst.msk [vmem:[%s1324_s11 + $0x8] sm:$0xff] %vm448_vm3, %v433_v30  ;;  %v390_v5 = vsel %vm374_vm6, 16843009, %v1230_v2 }
 0x151   : > { %v406_v10 = vunpack.c.0.s8 %v390_v5  ;;  %v365_v5 = vld [vmem:[%s1315_s8 + $0x1a] sm:$0x3] }
 0x152   : > { %v513_v34 = vpop.trf.xlu0 }
 0x153   : > { %v609_v35 = vsel %vm593_vm8, %v513_v34, 0.0  ;;  %vm550_vm8 = vnez %v534_v3  ;;  %vm422_vm11 = vcmp.ne.s32.totalorder %v406_v10, 0 }
 0x154   : > { %625 = vst.msk [vmem:[%s1324_s11 + $0x80] sm:$0xff] %vm448_vm3, %v609_v35  ;;  %v566_v11 = vsel %vm550_vm8, 16843009, %v1230_v2 }
 0x155   : > { %v582_v15 = vunpack.c.0.s8 %v566_v11  ;;  %v541_v11 = vld [vmem:[%s1315_s8 + $0x38] sm:$0x3] }
 0x156   : > { %v338_v39 = vpop.trf.xlu2 }
 0x157   : > { %v434_v40 = vsel %vm418_vm10, %v338_v39, 0.0  ;;  %vm375_vm10 = vnez %v359_v9  ;;  %vm598_vm13 = vcmp.ne.s32.totalorder %v582_v15, 0 }
 0x158   : > { %451 = vst.msk [vmem:[%s1324_s11 + $0x10] sm:$0xff] %vm448_vm3, %v434_v40  ;;  %v391_v16 = vsel %vm375_vm10, 16843009, %v1230_v2 }
 0x159   : > { %v407_v19 = vunpack.c.0.s8 %v391_v16  ;;  %v366_v16 = vld [vmem:[%s1315_s8 + $0x1c] sm:$0x3] }
 0x15a   : > { %v514_v44 = vpop.trf.xlu0 }
 0x15b   : > { %v610_v45 = vsel %vm594_vm12, %v514_v44, 0.0  ;;  %vm551_vm12 = vnez %v535_v14  ;;  %vm423_vm15 = vcmp.ne.s32.totalorder %v407_v19, 0 }
 0x15c   : > { %626 = vst.msk [vmem:[%s1324_s11 + $0x88] sm:$0xff] %vm448_vm3, %v610_v45  ;;  %v567_v20 = vsel %vm551_vm12, 16843009, %v1230_v2 }
 0x15d   : > { %v583_v24 = vunpack.c.0.s8 %v567_v20  ;;  %v542_v20 = vld [vmem:[%s1315_s8 + $0x3a] sm:$0x3] }
 0x15e   : > { %v339_v49 = vpop.trf.xlu2 }
 0x15f   : > { %v435_v50 = vsel %vm419_vm14, %v339_v49, 0.0  ;;  %vm376_vm14 = vnez %v360_v18  ;;  %vm599_vm1 = vcmp.ne.s32.totalorder %v583_v24, 0 }
 0x160   : > { %452 = vst.msk [vmem:[%s1324_s11 + $0x18] sm:$0xff] %vm448_vm3, %v435_v50  ;;  %v392_v25 = vsel %vm376_vm14, 16843009, %v1230_v2 }
 0x161   : > { %v408_v29 = vunpack.c.0.s8 %v392_v25  ;;  %v367_v25 = vld [vmem:[%s1315_s8 + $0x1e] sm:$0x3] }
 0x162   : > { %v515_v54 = vpop.trf.xlu0 }
 0x163   : > { %v611_v55 = vsel %vm595_vm0, %v515_v54, 0.0  ;;  %vm552_vm0 = vnez %v536_v23  ;;  %vm424_vm4 = vcmp.ne.s32.totalorder %v408_v29, 0 }
 0x164   : > { %627 = vst.msk [vmem:[%s1324_s11 + $0x90] sm:$0xff] %vm448_vm3, %v611_v55  ;;  %v568_v30 = vsel %vm552_vm0, 16843009, %v1230_v2 }
 0x165   : > { %v584_v34 = vunpack.c.0.s8 %v568_v30  ;;  %v543_v30 = vld [vmem:[%s1315_s8 + $0x3c] sm:$0x3] }
 0x166   : > { %v340_v59 = vpop.trf.xlu2 }
 0x167   : > { %v436_v60 = vsel %vm420_vm2, %v340_v59, 0.0  ;;  %vm377_vm2 = vnez %v361_v28  ;;  %vm600_vm6 = vcmp.ne.s32.totalorder %v584_v34, 0 }
 0x168   : > { %453 = vst.msk [vmem:[%s1324_s11 + $0x20] sm:$0xff] %vm448_vm3, %v436_v60  ;;  %v393_v35 = vsel %vm377_vm2, 16843009, %v1230_v2 }
 0x169   : > { %v409_v39 = vunpack.c.0.s8 %v393_v35 }
 0x16a   : > { %v516_v0 = vpop.trf.xlu0 }
 0x16b   : > { %v612_v1 = vsel %vm596_vm5, %v516_v0, 0.0  ;;  %vm553_vm5 = vnez %v537_v33  ;;  %vm425_vm8 = vcmp.ne.s32.totalorder %v409_v39, 0  ;;  %v544_v39 = vld [vmem:[%s1315_s8 + $0x3e] sm:$0x3] }
 0x16c   : > { %628 = vst.msk [vmem:[%s1324_s11 + $0x98] sm:$0xff] %vm448_vm3, %v612_v1  ;;  %v569_v40 = vsel %vm553_vm5, 16843009, %v1230_v2 }
 0x16d   : > { %v585_v44 = vunpack.c.0.s8 %v569_v40 }
 0x16e   : > { %v341_v6 = vpop.trf.xlu2 }
 0x16f   : > { %v437_v8 = vsel %vm421_vm7, %v341_v6, 0.0  ;;  %vm378_vm7 = vnez %v362_v38  ;;  %vm601_vm10 = vcmp.ne.s32.totalorder %v585_v44, 0 }
 0x170   : > { %454 = vst.msk [vmem:[%s1324_s11 + $0x28] sm:$0xff] %vm448_vm3, %v437_v8  ;;  %v394_v45 = vsel %vm378_vm7, 16843009, %v1230_v2 }
 0x171   : > { %v410_v49 = vunpack.c.0.s8 %v394_v45 }
 0x172   : > { %v517_v12 = vpop.trf.xlu0 }
 0x173   : > { %v613_v13 = vsel %vm597_vm9, %v517_v12, 0.0  ;;  %vm554_vm9 = vnez %v538_v43  ;;  %vm426_vm12 = vcmp.ne.s32.totalorder %v410_v49, 0 }
 0x174   : > { %629 = vst.msk [vmem:[%s1324_s11 + $0xa0] sm:$0xff] %vm448_vm3, %v613_v13  ;;  %v570_v50 = vsel %vm554_vm9, 16843009, %v1230_v2 }
 0x175   : > { %v586_v54 = vunpack.c.0.s8 %v570_v50 }
 0x176   : > { %v342_v7 = vpop.trf.xlu2 }
 0x177   : > { %v438_v17 = vsel %vm422_vm11, %v342_v7, 0.0  ;;  %vm379_vm11 = vnez %v363_v48  ;;  %vm602_vm14 = vcmp.ne.s32.totalorder %v586_v54, 0 }
 0x178   : > { %455 = vst.msk [vmem:[%s1324_s11 + $0x30] sm:$0xff] %vm448_vm3, %v438_v17  ;;  %v395_v55 = vsel %vm379_vm11, 16843009, %v1230_v2 }
 0x179   : > { %v411_v59 = vunpack.c.0.s8 %v395_v55 }
 0x17a   : > { %v518_v21 = vpop.trf.xlu0 }
 0x17b   : > { %v614_v22 = vsel %vm598_vm13, %v518_v21, 0.0  ;;  %vm555_vm13 = vnez %v539_v53  ;;  %vm427_vm0 = vcmp.ne.s32.totalorder %v411_v59, 0 }
 0x17c   : > { %630 = vst.msk [vmem:[%s1324_s11 + $0xa8] sm:$0xff] %vm448_vm3, %v614_v22  ;;  %v571_v60 = vsel %vm555_vm13, 16843009, %v1230_v2 }
 0x17d   : > { %v587_v0 = vunpack.c.0.s8 %v571_v60 }
 0x17e   : > { %v343_v26 = vpop.trf.xlu2 }
 0x17f   : > { %v439_v27 = vsel %vm423_vm15, %v343_v26, 0.0  ;;  %vm380_vm15 = vnez %v364_v58  ;;  %vm603_vm2 = vcmp.ne.s32.totalorder %v587_v0, 0 }
 0x180   : > { %456 = vst.msk [vmem:[%s1324_s11 + $0x38] sm:$0xff] %vm448_vm3, %v439_v27  ;;  %v396_v1 = vsel %vm380_vm15, 16843009, %v1230_v2 }
 0x181   : > { %v412_v6 = vunpack.c.0.s8 %v396_v1 }
 0x182   : > { %v519_v31 = vpop.trf.xlu0 }
 0x183   : > { %v615_v32 = vsel %vm599_vm1, %v519_v31, 0.0  ;;  %vm556_vm1 = vnez %v540_v63  ;;  %vm428_vm5 = vcmp.ne.s32.totalorder %v412_v6, 0 }
 0x184   : > { %631 = vst.msk [vmem:[%s1324_s11 + $0xb0] sm:$0xff] %vm448_vm3, %v615_v32  ;;  %v572_v8 = vsel %vm556_vm1, 16843009, %v1230_v2  ;;  %vm560_vm1 = vnez %v544_v39 }
 0x185   : > { %v588_v12 = vunpack.c.0.s8 %v572_v8  ;;  %v576_v43 = vsel %vm560_vm1, 16843009, %v1230_v2 }
 0x186   : > { %v344_v36 = vpop.trf.xlu2 }
 0x187   : > { %v440_v37 = vsel %vm424_vm4, %v344_v36, 0.0  ;;  %vm381_vm4 = vnez %v365_v5  ;;  %vm604_vm7 = vcmp.ne.s32.totalorder %v588_v12, 0 }
 0x188   : > { %457 = vst.msk [vmem:[%s1324_s11 + $0x40] sm:$0xff] %vm448_vm3, %v440_v37  ;;  %v397_v13 = vsel %vm381_vm4, 16843009, %v1230_v2 }
 0x189   : > { %v413_v7 = vunpack.c.0.s8 %v397_v13 }
 0x18a   : > { %v520_v41 = vpop.trf.xlu0 }
 0x18b   : > { %v616_v42 = vsel %vm600_vm6, %v520_v41, 0.0  ;;  %vm557_vm6 = vnez %v541_v11  ;;  %vm429_vm9 = vcmp.ne.s32.totalorder %v413_v7, 0 }
 0x18c   : > { %632 = vst.msk [vmem:[%s1324_s11 + $0xb8] sm:$0xff] %vm448_vm3, %v616_v42  ;;  %v573_v17 = vsel %vm557_vm6, 16843009, %v1230_v2 }
 0x18d   : > { %v589_v21 = vunpack.c.0.s8 %v573_v17 }
 0x18e   : > { %v345_v46 = vpop.trf.xlu2 }
 0x18f   : > { %v441_v47 = vsel %vm425_vm8, %v345_v46, 0.0  ;;  %vm382_vm8 = vnez %v366_v16  ;;  %vm605_vm11 = vcmp.ne.s32.totalorder %v589_v21, 0  ;;  %v592_v46 = vunpack.c.0.s8 %v576_v43 }
 0x190   : > { %458 = vst.msk [vmem:[%s1324_s11 + $0x48] sm:$0xff] %vm448_vm3, %v441_v47  ;;  %v398_v22 = vsel %vm382_vm8, 16843009, %v1230_v2 }
 0x191   : > { %v414_v26 = vunpack.c.0.s8 %v398_v22  ;;  %vm608_vm4 = vcmp.ne.s32.totalorder %v592_v46, 0 }
 0x192   : > { %v521_v51 = vpop.trf.xlu0 }
 0x193   : > { %v617_v52 = vsel %vm601_vm10, %v521_v51, 0.0  ;;  %vm558_vm10 = vnez %v542_v20  ;;  %vm430_vm13 = vcmp.ne.s32.totalorder %v414_v26, 0 }
 0x194   : > { %633 = vst.msk [vmem:[%s1324_s11 + $0xc0] sm:$0xff] %vm448_vm3, %v617_v52  ;;  %v574_v27 = vsel %vm558_vm10, 16843009, %v1230_v2 }
 0x195   : > { %v590_v31 = vunpack.c.0.s8 %v574_v27 }
 0x196   : > { %v346_v56 = vpop.trf.xlu2 }
 0x197   : > { %v442_v57 = vsel %vm426_vm12, %v346_v56, 0.0  ;;  %vm383_vm12 = vnez %v367_v25  ;;  %vm606_vm15 = vcmp.ne.s32.totalorder %v590_v31, 0 }
 0x198   : > { %459 = vst.msk [vmem:[%s1324_s11 + $0x50] sm:$0xff] %vm448_vm3, %v442_v57  ;;  %v399_v32 = vsel %vm383_vm12, 16843009, %v1230_v2 }
 0x199   : > { %v415_v35 = vunpack.c.0.s8 %v399_v32 }
 0x19a   : > { %v522_v61 = vpop.trf.xlu0 }
 0x19b   : > { %v618_v62 = vsel %vm602_vm14, %v522_v61, 0.0  ;;  %vm559_vm14 = vnez %v543_v30 }
 0x19c   : > { %634 = vst.msk [vmem:[%s1324_s11 + $0xc8] sm:$0xff] %vm448_vm3, %v618_v62  ;;  %v575_v36 = vsel %vm559_vm14, 16843009, %v1230_v2 }
 0x19d   : > { %v591_v40 = vunpack.c.0.s8 %v575_v36 }
 0x19e   : > { %v347_v3 = vpop.trf.xlu2 }
 0x19f   : > { %v443_v4 = vsel %vm427_vm0, %v347_v3, 0.0  ;;  %vm431_vm0 = vcmp.ne.s32.totalorder %v415_v35, 0 }
 0x1a0   : > { %460 = vst.msk [vmem:[%s1324_s11 + $0x58] sm:$0xff] %vm448_vm3, %v443_v4 }
 0x1a2   : > { %v523_v9 = vpop.trf.xlu0 }
 0x1a3   : > { %v619_v10 = vsel %vm603_vm2, %v523_v9, 0.0  ;;  %vm607_vm2 = vcmp.ne.s32.totalorder %v591_v40, 0 }
 0x1a4   : > { %635 = vst.msk [vmem:[%s1324_s11 + $0xd0] sm:$0xff] %vm448_vm3, %v619_v10 }
 0x1a6   : > { %v348_v14 = vpop.trf.xlu2 }
 0x1a7   : > { %v444_v15 = vsel %vm428_vm5, %v348_v14, 0.0 }
 0x1a8   : > { %461 = vst.msk [vmem:[%s1324_s11 + $0x60] sm:$0xff] %vm448_vm3, %v444_v15 }
 0x1aa   : > { %v524_v18 = vpop.trf.xlu0 }
 0x1ab   : > { %v620_v19 = vsel %vm604_vm7, %v524_v18, 0.0 }
 0x1ac   : > { %636 = vst.msk [vmem:[%s1324_s11 + $0xd8] sm:$0xff] %vm448_vm3, %v620_v19 }
 0x1ae   : > { %v349_v23 = vpop.trf.xlu2 }
 0x1af   : > { %v445_v24 = vsel %vm429_vm9, %v349_v23, 0.0 }
 0x1b0   : > { %462 = vst.msk [vmem:[%s1324_s11 + $0x68] sm:$0xff] %vm448_vm3, %v445_v24 }
 0x1b2   : > { %v525_v28 = vpop.trf.xlu0 }
 0x1b3   : > { %v621_v29 = vsel %vm605_vm11, %v525_v28, 0.0 }
 0x1b4   : > { %637 = vst.msk [vmem:[%s1324_s11 + $0xe0] sm:$0xff] %vm448_vm3, %v621_v29 }
 0x1b6   : > { %v350_v33 = vpop.trf.xlu2 }
 0x1b7   : > { %v446_v34 = vsel %vm430_vm13, %v350_v33, 0.0 }
 0x1b8   : > { %463 = vst.msk [vmem:[%s1324_s11 + $0x70] sm:$0xff] %vm448_vm3, %v446_v34 }
 0x1ba   : > { %v526_v37 = vpop.trf.xlu0 }
 0x1bb   : > { %v622_v38 = vsel %vm606_vm15, %v526_v37, 0.0 }
 0x1bc   : > { %638 = vst.msk [vmem:[%s1324_s11 + $0xe8] sm:$0xff] %vm448_vm3, %v622_v38 }
 0x1be   : > { %v351_v41 = vpop.trf.xlu2 }
 0x1bf   : > { %v447_v42 = vsel %vm431_vm0, %v351_v41, 0.0 }
 0x1c0   : > { %464 = vst.msk [vmem:[%s1324_s11 + $0x78] sm:$0xff] %vm448_vm3, %v447_v42 }
 0x1c2   : > { %v527_v44 = vpop.trf.xlu0 }
 0x1c3   : > { %v623_v45 = vsel %vm607_vm2, %v527_v44, 0.0 }
 0x1c4   : > { %639 = vst.msk [vmem:[%s1324_s11 + $0xf0] sm:$0xff] %vm448_vm3, %v623_v45 }
 0x1c8   : > { %647 = sbr.rel (!%p1281_p4) target bundleno = 525 (0x20d), region = 36 }
 0x1ca   : > { %v528_v47 = vpop.trf.xlu0 }
 0x1cb   : > { %v624_v48 = vsel %vm608_vm4, %v528_v47, 0.0 }
 0x1cc   : > { %640 = vst.msk [vmem:[%s1324_s11 + $0xf8] sm:$0xff] %vm448_vm3, %v624_v48 }
 0x1cd   : > { %s1606_s12 = smov (!%p650_p9, %s649_s12), 32 }
 0x1ce   : > { %s1004_s22 = sshll.u32 %s1606_s12, 3 }
 0x1cf   : > { %p1007_p10 = scmp.eq.s32.totalorder %s1004_s22, 0 }
 0x1d0   : > { %s1461_s23 = sshrl.u32 (!%p1007_p10), %s1606_s12, 5 }
 0x1d1   : > { %658 = sbr.rel (%p1007_p10) target bundleno = 525 (0x20d), region = 40  ;;  %p1008_p11 = scmp.le.s32.totalorder (!%p1007_p10), %s1461_s23, 0 }
 0x1d6   : > { %943 = sbr.rel (%p1008_p11) target bundleno = 508 (0x1fc), region = 119  ;;  %s1595_s15 = smov (!%p1008_p11), %s1455_s21 }
 0x1d7   : > { %s1596_s20 = smov (!%p1008_p11), %s1324_s11  ;;  %s1470_s24 = smov (!%p1008_p11), 0  }
 0x1d8   : > { %s1472_s25 = smov (!%p1008_p11), 0  }
 0x1db LB: >> { %v783_v2 = vld [vmem:[%s1204_s20] sm:$0xff]  ;;  %v785_v49 = vld [vmem:[%s1204_s20 + $0x8] sm:$0xff]  ;;  %v787_v50 = vld [vmem:[%s1204_s20 + $0x10] sm:$0xff]  ;;  %s847_s26 = sadd.s32 1, %s1208_s24  ;;  %s777_s25 = sadd.s32 1, %s1212_s25   ;;  %s1212_s25 = sphi %s1472_s25, %s777_s25   ;;  %s1208_s24 = sphi %s1470_s24, %s1599_s24   ;;  %s1204_s20 = sphi %s1596_s20, %s1598_s20   ;;  %s1200_s15 = sphi %s1595_s15, %s1597_s15  }
 0x1dc   : >> { %784 = vst [vmem:[%s1200_s15] sm:$0xff] %v783_v2  ;;  %v789_v51 = vld [vmem:[%s1204_s20 + $0x18] sm:$0xff]  ;;  %p848_p12 = scmp.ge.s32.totalorder %s847_s26, %s1461_s23  ;;  %v791_v52 = vld [vmem:[%s1204_s20 + $0x20] sm:$0xff]  ;;  %v793_v53 = vld [vmem:[%s1204_s20 + $0x28] sm:$0xff]  ;;  %p776_p13 = scmp.ge.s32.totalorder %s777_s25, %s1461_s23 }
 0x1dd   : >> { %786 = vst [vmem:[%s1200_s15 + $0x8] sm:$0xff] %v785_v49  ;;  %v795_v54 = vld [vmem:[%s1204_s20 + $0x30] sm:$0xff]  ;;  %v797_v55 = vld [vmem:[%s1204_s20 + $0x38] sm:$0xff]  ;;  %v799_v56 = vld [vmem:[%s1204_s20 + $0x40] sm:$0xff] }
 0x1de   : >> { %788 = vst [vmem:[%s1200_s15 + $0x10] sm:$0xff] %v787_v50  ;;  %s1608_s26 = smov (%p848_p12, %s847_s26), 0  ;;  %v801_v57 = vld [vmem:[%s1204_s20 + $0x48] sm:$0xff]  ;;  %v803_v58 = vld [vmem:[%s1204_s20 + $0x50] sm:$0xff]  ;;  %v805_v59 = vld [vmem:[%s1204_s20 + $0x58] sm:$0xff] }
 0x1df   : >> { %790 = vst [vmem:[%s1200_s15 + $0x18] sm:$0xff] %v789_v51  ;;  %s1009_s27 = sshll.u32 %s1608_s26, 8  ;;  %v807_v60 = vld [vmem:[%s1204_s20 + $0x60] sm:$0xff]  ;;  %v809_v61 = vld [vmem:[%s1204_s20 + $0x68] sm:$0xff]  ;;  %v811_v62 = vld [vmem:[%s1204_s20 + $0x70] sm:$0xff]  ;;  %s1599_s24 = smov %s1608_s26 }
 0x1e0   : >> { %792 = vst [vmem:[%s1200_s15 + $0x20] sm:$0xff] %v791_v52  ;;  %s1504_s28 = scalar_lea.vmem %s1324_s11, %s1009_s27 [#allocation2]   ;;  %s1507_s29 = scalar_lea.vmem %s1455_s21, %s1009_s27   ;;  %v813_v63 = vld [vmem:[%s1204_s20 + $0x78] sm:$0xff]  ;;  %v815_v0 = vld [vmem:[%s1204_s20 + $0x80] sm:$0xff]  ;;  %v817_v1 = vld [vmem:[%s1204_s20 + $0x88] sm:$0xff] }
 0x1e1   : >> { %794 = vst [vmem:[%s1200_s15 + $0x28] sm:$0xff] %v793_v53  ;;  %v819_v3 = vld [vmem:[%s1204_s20 + $0x90] sm:$0xff]  ;;  %v821_v4 = vld [vmem:[%s1204_s20 + $0x98] sm:$0xff]  ;;  %v823_v5 = vld [vmem:[%s1204_s20 + $0xa0] sm:$0xff] }
 0x1e2   : >> { %796 = vst [vmem:[%s1200_s15 + $0x30] sm:$0xff] %v795_v54  ;;  %v825_v6 = vld [vmem:[%s1204_s20 + $0xa8] sm:$0xff]  ;;  %v827_v8 = vld [vmem:[%s1204_s20 + $0xb0] sm:$0xff]  ;;  %v829_v9 = vld [vmem:[%s1204_s20 + $0xb8] sm:$0xff] }
 0x1e3   : >> { %798 = vst [vmem:[%s1200_s15 + $0x38] sm:$0xff] %v797_v55  ;;  %v831_v10 = vld [vmem:[%s1204_s20 + $0xc0] sm:$0xff]  ;;  %v833_v11 = vld [vmem:[%s1204_s20 + $0xc8] sm:$0xff]  ;;  %v835_v12 = vld [vmem:[%s1204_s20 + $0xd0] sm:$0xff] }
 0x1e4   : >> { %800 = vst [vmem:[%s1200_s15 + $0x40] sm:$0xff] %v799_v56  ;;  %v837_v13 = vld [vmem:[%s1204_s20 + $0xd8] sm:$0xff]  ;;  %v839_v14 = vld [vmem:[%s1204_s20 + $0xe0] sm:$0xff]  ;;  %v841_v15 = vld [vmem:[%s1204_s20 + $0xe8] sm:$0xff] }
 0x1e5   : >> { %802 = vst [vmem:[%s1200_s15 + $0x48] sm:$0xff] %v801_v57  ;;  %v843_v16 = vld [vmem:[%s1204_s20 + $0xf0] sm:$0xff]  ;;  %v845_v7 = vld [vmem:[%s1204_s20 + $0xf8] sm:$0xff]  ;;  %s1598_s20 = smov %s1504_s28 }
 0x1e6   : >> { %804 = vst [vmem:[%s1200_s15 + $0x50] sm:$0xff] %v803_v58 }
 0x1e7   : >> { %806 = vst [vmem:[%s1200_s15 + $0x58] sm:$0xff] %v805_v59 }
 0x1e8   : >> { %808 = vst [vmem:[%s1200_s15 + $0x60] sm:$0xff] %v807_v60 }
 0x1e9   : >> { %810 = vst [vmem:[%s1200_s15 + $0x68] sm:$0xff] %v809_v61 }
 0x1ea   : >> { %812 = vst [vmem:[%s1200_s15 + $0x70] sm:$0xff] %v811_v62 }
 0x1eb   : >> { %814 = vst [vmem:[%s1200_s15 + $0x78] sm:$0xff] %v813_v63 }
 0x1ec   : >> { %816 = vst [vmem:[%s1200_s15 + $0x80] sm:$0xff] %v815_v0 }
 0x1ed   : >> { %818 = vst [vmem:[%s1200_s15 + $0x88] sm:$0xff] %v817_v1 }
 0x1ee   : >> { %820 = vst [vmem:[%s1200_s15 + $0x90] sm:$0xff] %v819_v3 }
 0x1ef   : >> { %822 = vst [vmem:[%s1200_s15 + $0x98] sm:$0xff] %v821_v4 }
 0x1f0   : >> { %824 = vst [vmem:[%s1200_s15 + $0xa0] sm:$0xff] %v823_v5 }
 0x1f1   : >> { %826 = vst [vmem:[%s1200_s15 + $0xa8] sm:$0xff] %v825_v6 }
 0x1f2   : >> { %828 = vst [vmem:[%s1200_s15 + $0xb0] sm:$0xff] %v827_v8 }
 0x1f3   : >> { %830 = vst [vmem:[%s1200_s15 + $0xb8] sm:$0xff] %v829_v9 }
 0x1f4   : >> { %832 = vst [vmem:[%s1200_s15 + $0xc0] sm:$0xff] %v831_v10 }
 0x1f5   : >> { %834 = vst [vmem:[%s1200_s15 + $0xc8] sm:$0xff] %v833_v11 }
 0x1f6   : >> { %836 = vst [vmem:[%s1200_s15 + $0xd0] sm:$0xff] %v835_v12 }
 0x1f7   : >> { %838 = vst [vmem:[%s1200_s15 + $0xd8] sm:$0xff] %v837_v13  ;;  %779 = sbr.rel (!%p776_p13) target bundleno = 475 (0x1db), region = 125 }
 0x1f8   : >> { %840 = vst [vmem:[%s1200_s15 + $0xe0] sm:$0xff] %v839_v14 }
 0x1f9   : >> { %842 = vst [vmem:[%s1200_s15 + $0xe8] sm:$0xff] %v841_v15 }
 0x1fa   : >> { %844 = vst [vmem:[%s1200_s15 + $0xf0] sm:$0xff] %v843_v16 }
 0x1fb   : >> { %846 = vst [vmem:[%s1200_s15 + $0xf8] sm:$0xff] %v845_v7  ;;  %s1597_s15 = smov %s1507_s29 }
 0x1fc PF: > { %s1572_s30 = sand.u32 31, %s1606_s12   ;;  %s1020_s4 = sshll.u32 %s1461_s23, 8 }
 0x1fd   : > { %s858_s5 = scalar_lea.vmem %s1324_s11, %s1020_s4 [#allocation2]   ;;  %s860_s6 = scalar_lea.vmem %s1455_s21, %s1020_s4  }
 0x1fe   : > { %p1014_p0 = scmp.le.s32.totalorder %s1572_s30, 0 }
 0x1ff   : > { %s1214_s7 = smov (!%p1014_p0), %s860_s6   ;;  %s1218_s8 = smov (!%p1014_p0), %s858_s5  }
 0x200   : > { %957 = sbr.rel (%p1014_p0) target bundleno = 525 (0x20d), region = 130  ;;  %s1222_s9 = smov (!%p1014_p0), 0  }
 0x201   : > { %s1226_s10 = smov (!%p1014_p0), 0  }
 0x205 LB: >> { %v870_v17 = vld [vmem:[%s1220_s8] sm:$0xff]  ;;  %s872_s12 = sadd.s32 1, %s1224_s9  ;;  %s864_s10 = sadd.s32 1, %s1228_s10   ;;  %s1228_s10 = sphi %s1226_s10, %s864_s10   ;;  %s1224_s9 = sphi %s1222_s9, %s1223_s9   ;;  %s1220_s8 = sphi %s1218_s8, %s877_s8   ;;  %s1216_s7 = sphi %s1214_s7, %s878_s7  }
 0x206   : >> { %871 = vst [vmem:[%s1216_s7] sm:$0xff] %v870_v17  ;;  %p873_p1 = scmp.ge.s32.totalorder %s872_s12, %s1572_s30  ;;  %p863_p2 = scmp.ge.s32.totalorder %s864_s10, %s1572_s30 }
 0x208   : >> { %s1610_s12 = smov (%p873_p1, %s872_s12), 0  ;;  %866 = sbr.rel (!%p863_p2) target bundleno = 517 (0x205), region = 136 }
 0x209   : >> { %s1015_s11 = sshll.u32 %s1610_s12, 3  ;;  %s1223_s9 = smov %s1610_s12  }
 0x20a   : >> { %s877_s8 = scalar_lea.vmem %s858_s5, %s1015_s11 [#allocation2]   ;;  %s878_s7 = scalar_lea.vmem %s860_s6, %s1015_s11  }
 0x20d PF: > { %p10_p3 = scmp.ge.s32.totalorder %s1271_s16, 4   ;;  %s1600_s12 = smov %s1192_s13 }
 0x20e   : > { %s1601_s13 = smov %s1279_s19  ;;  %s1602_s14 = smov %s1271_s16 }
 0x20f   :  { %12 = sbr.rel (!%p10_p3) target bundleno = 2 (0x2), region = 147 }

</bundles_post_ra>
